<compile_context>
chip_gen: v7x
topology: tpu7x:2x2x1
jax: 0.10.0
libtpu: 0.0.40
codegen_flags: <defaults>
</compile_context>

<pallas_src>
import numpy as np
import jax
import jax.numpy as jnp
from jax.experimental import pallas as pl
from jax.experimental.pallas import tpu as pltpu

NUM_JOINTS = 24
NUM_BETAS = 10
NUM_POSEDIRS = 9 * (NUM_JOINTS - 1)  # 207
# Standard SMPL kinematic tree (parent of root is unused).
SMPL_PARENTS = [-1, 0, 0, 0, 1, 2, 3, 4, 5, 6, 7, 8, 9, 9, 9,
                12, 13, 14, 16, 17, 18, 19, 20, 21]


def _kinematic_levels(parents):
    depth = [0] * len(parents)
    for i in range(1, len(parents)):
        depth[i] = depth[parents[i]] + 1
    return [[i for i, d in enumerate(depth) if d == lvl]
            for lvl in range(max(depth) + 1)]


KIN_LEVELS = _kinematic_levels(SMPL_PARENTS)  # 9 levels, depth <= 8


# ----------------------------------------------------------------------------
# Fused blend-shape + linear-blend-skinning Pallas kernel (tiled over V)
# ----------------------------------------------------------------------------
def _smpl_lbs_kernel(lhs_ref, dirs_ref, vtmpl_ref, a_ref, wT_ref, out_ref):
    # lhs   : (Bp, 217)      bf16  [betas | pose_map], batch padded to 8n
    # dirs  : (3, 217, TV)   bf16  per-coordinate blend-shape basis tile
    # vtmpl : (3, TV)        f32   rest template tile (planar)
    # a     : (16*Bp, J)     f32   skinning transforms, rows grouped (r, c, b)
    # wT    : (J, TV)        f32   skinning weights tile
    # out   : (3, Bp, TV)    f32   skinned vertices (planar, V lane-dense)
    Bp = lhs_ref.shape[0]
    lhs = lhs_ref[...]

    # Blend shapes: one MXU matmul per coordinate plane, V stays lane-dense.
    vp = [vtmpl_ref[c:c + 1, :]
          + jnp.dot(lhs, dirs_ref[c], preferred_element_type=jnp.float32)
          for c in range(3)]                                     # 3 x (Bp, TV)

    # One skinning matmul for the whole (padded) batch: (16*Bp, J) @ (J, TV).
    T = jnp.dot(a_ref[...], wT_ref[...],
                preferred_element_type=jnp.float32)              # (16*Bp, TV)

    def entry(r, c):
        k = (4 * r + c) * Bp
        return T[k:k + Bp, :]          # contiguous (Bp, TV) sublane-tile slab

    # out[r] = T[r,3] + sum_c T[r,c] * vp[c]  (homogeneous 1 folded into add)
    for r in range(3):
        acc = entry(r, 3)
        for c in range(3):
            acc = acc + entry(r, c) * vp[c]
        out_ref[r] = acc               # direct lane-dense store, no concat


def smpl_lbs_pallas(lhs, dirs, vtmpl, a_mat, wT, *, tile_v=None):
    Bp, K = lhs.shape
    _, _, V = dirs.shape
    J = wT.shape[0]
    if tile_v is None:
        tile_v = V
        for cand in (512, 256, 128):
            if V % cand == 0:
                tile_v = cand
                break
    assert V % tile_v == 0, "V must be a multiple of tile_v (pad V upstream)"
    grid = (V // tile_v,)

    flops = 2 * Bp * K * 3 * V + 2 * (16 * Bp) * J * V + 2 * 9 * Bp * V
    bytes_accessed = (dirs.size * dirs.dtype.itemsize
                      + lhs.size * lhs.dtype.itemsize
                      + vtmpl.size * 4 + a_mat.size * 4 + wT.size * 4
                      + 3 * Bp * V * 4)

    return pl.pallas_call(
        _smpl_lbs_kernel,
        out_shape=jax.ShapeDtypeStruct((3, Bp, V), jnp.float32),
        grid=grid,
        in_specs=[pl.BlockSpec((Bp, K), lambda i: (0, 0)),
                  pl.BlockSpec((3, K, tile_v), lambda i: (0, 0, i)),
                  pl.BlockSpec((3, tile_v), lambda i: (0, i)),
                  pl.BlockSpec((16 * Bp, J), lambda i: (0, 0)),
                  pl.BlockSpec((J, tile_v), lambda i: (0, i))],
        out_specs=pl.BlockSpec((3, Bp, tile_v), lambda i: (0, 0, i)),
        compiler_params=pltpu.CompilerParams(
            dimension_semantics=("parallel",),
            vmem_limit_bytes=32 * 1024 * 1024),
        cost_estimate=pl.CostEstimate(flops=int(flops), transcendentals=0,
                                      bytes_accessed=int(bytes_accessed)),
    )(lhs, dirs, vtmpl, a_mat, wT)


# ----------------------------------------------------------------------------
# One-time parameter preparation (planar layouts + regressor contraction)
# ----------------------------------------------------------------------------
def prepare_smpl_params(params, dirs_dtype=jnp.bfloat16):
    v_template = jnp.asarray(params['v_template'], jnp.float32)    # (V, 3)
    shapedirs = jnp.asarray(params['shapedirs'], jnp.float32)      # (V, 3, 10)
    posedirs = jnp.asarray(params['posedirs'], jnp.float32)        # (V, 3, 207)
    J_regressor = jnp.asarray(params['J_regressor'], jnp.float32)  # (24, V)
    weights = jnp.asarray(params['weights'], jnp.float32)          # (V, 24)

    # Coordinate-planar blend-shape bases stacked into one (3, 217, V) RHS.
    sdirs = jnp.transpose(shapedirs, (1, 2, 0))                    # (3, 10, V)
    pdirs = jnp.transpose(posedirs, (1, 2, 0))                     # (3, 207, V)
    dirs = jnp.concatenate([sdirs, pdirs], axis=1).astype(dirs_dtype)
    vtmpl = jnp.transpose(v_template, (1, 0))                      # (3, V)

    # Algebraic elimination of the J_regressor stage:
    #   th_j = Jr @ (v_template + shapedirs . betas) = j_const + betas @ j_dirs
    j_const = jnp.dot(J_regressor, v_template)                     # (24, 3)
    j_dirs = jnp.einsum('jv,vck->kjc', J_regressor, shapedirs)
    j_dirs = j_dirs.reshape(NUM_BETAS, NUM_JOINTS * 3)             # (10, 72)

    return {'dirs': dirs, 'vtmpl': vtmpl, 'j_const': j_const,
            'j_dirs': j_dirs, 'weights_T': weights.T}


# ----------------------------------------------------------------------------
# Plain-JAX glue (axis-angle -> rotmats, kinematic chain, trans handling)
# ----------------------------------------------------------------------------
def _quat2mat(quat):
    n = quat / jnp.linalg.norm(quat, axis=1, keepdims=True)
    w, x, y, z = n[:, 0], n[:, 1], n[:, 2], n[:, 3]
    w2, x2, y2, z2 = w * w, x * x, y * y, z * z
    wx, wy, wz = w * x, w * y, w * z
    xy, xz, yz = x * y, x * z, y * z
    rot = jnp.stack([w2 + x2 - y2 - z2, 2 * xy - 2 * wz, 2 * wy + 2 * xz,
                     2 * wz + 2 * xy, w2 - x2 + y2 - z2, 2 * yz - 2 * wx,
                     2 * xz - 2 * wy, 2 * wx + 2 * yz, w2 - x2 - y2 + z2], axis=1)
    return rot.reshape(-1, 3, 3)


def _posemap_axisang(pose):
    B = pose.shape[0]
    aa = pose.reshape(B * NUM_JOINTS, 3)
    # NOTE: epsilon added per-component to match the original SMPL code quirk.
    angle = jnp.linalg.norm(aa + 1e-8, axis=1, keepdims=True)
    axis = aa / angle
    half = angle * 0.5
    quat = jnp.concatenate([jnp.cos(half), jnp.sin(half) * axis], axis=1)
    return _quat2mat(quat).reshape(B, NUM_JOINTS * 9)


def _apply_trans(th_verts, th_jtr, trans, center_idx):
    # jit-safe version of the original `if trans is None or norm(trans)==0`.
    if trans is None:
        if center_idx is not None:
            center = th_jtr[:, center_idx:center_idx + 1]
            th_jtr = th_jtr - center
            th_verts = th_verts - center
        return th_verts, th_jtr
    if center_idx is not None:
        center = th_jtr[:, center_idx:center_idx + 1]
        jtr_c, verts_c = th_jtr - center, th_verts - center
    else:
        jtr_c, verts_c = th_jtr, th_verts
    is_zero = jnp.sum(trans * trans) == 0.0
    th_jtr = jnp.where(is_zero, jtr_c, th_jtr + trans[:, None, :])
    th_verts = jnp.where(is_zero, verts_c, th_verts + trans[:, None, :])
    return th_verts, th_jtr


def smpl_forward(pose_axisang, betas, trans, prepared, *,
                 center_idx=None, tile_v=None):
    """Optimized forward: level-batched chain + fused Pallas blend+LBS."""
    B = pose_axisang.shape[0]
    rotmats = _posemap_axisang(pose_axisang)                       # (B, 216)
    rot_all = rotmats.reshape(B, NUM_JOINTS, 3, 3)
    pose_rotmat = rotmats[:, 9:]                                   # (B, 207)
    id_flat = jnp.tile(jnp.eye(3, dtype=jnp.float32).reshape(-1),
                       (NUM_JOINTS - 1,))
    pose_map = pose_rotmat - id_flat                               # (B, 207)

    # Joint rest positions (J_regressor eliminated at prep time).
    th_j = (prepared['j_const'][None]
            + jnp.dot(betas, prepared['j_dirs']).reshape(B, NUM_JOINTS, 3))

    # Relative 4x4 transforms for all joints at once.
    parents = np.asarray(SMPL_PARENTS[1:])
    off = jnp.concatenate([th_j[:, :1], th_j[:, 1:] - th_j[:, parents]], axis=1)
    bottom = jnp.broadcast_to(jnp.array([0., 0., 0., 1.], jnp.float32),
                              (B, NUM_JOINTS, 1, 4))
    rel = jnp.concatenate(
        [jnp.concatenate([rot_all, off[..., None]], axis=3), bottom], axis=2)

    # Kinematic chain batched by tree depth: <= 8 dependent steps, not 23.
    glob = jnp.zeros((B, NUM_JOINTS, 4, 4), jnp.float32)
    glob = glob.at[:, 0].set(rel[:, 0])
    for level in KIN_LEVELS[1:]:
        idx = np.asarray(level)
        par = np.asarray([SMPL_PARENTS[i] for i in level])
        glob = glob.at[:, idx].set(
            jnp.einsum('bnij,bnjk->bnik', glob[:, par], rel[:, idx]))

    th_jtr = glob[:, :, :3, 3]                                     # (B, 24, 3)

    # Subtract rest-pose joint locations from the global transforms.
    tmp = jnp.einsum('bjrc,bjc->bjr', glob[:, :, :, :3], th_j)     # (B, 24, 4)
    A = jnp.concatenate([glob[..., :3], (glob[..., 3] - tmp)[..., None]],
                        axis=-1)                                    # (B,24,4,4)

    # Pad batch to a multiple of 8 (full sublanes / denser MXU rows).
    Bp = ((B + 7) // 8) * 8
    lhs = jnp.concatenate([betas, pose_map], axis=1)               # (B, 217)
    lhs_p = jnp.pad(lhs, ((0, Bp - B), (0, 0))).astype(prepared['dirs'].dtype)
    A_p = jnp.pad(A, ((0, Bp - B), (0, 0), (0, 0), (0, 0)))
    # Rows grouped (r, c, b) so each transform entry is a contiguous slab.
    a_mat = jnp.transpose(A_p, (2, 3, 0, 1)).reshape(16 * Bp, NUM_JOINTS)

    verts_p = smpl_lbs_pallas(lhs_p, prepared['dirs'], prepared['vtmpl'],
                              a_mat, prepared['weights_T'], tile_v=tile_v)
    th_verts = jnp.transpose(verts_p, (1, 2, 0))[:B]               # (B, V, 3)

    return _apply_trans(th_verts, th_jtr, trans, center_idx)


def smpl_forward_ref(pose_axisang, betas, trans, params, *, center_idx=None):
    """Pure-JAX reference that mirrors the original PyTorch formulation."""
    B = pose_axisang.shape[0]
    V = params['v_template'].shape[0]
    rotmats = _posemap_axisang(pose_axisang)
    root_rot = rotmats[:, :9].reshape(B, 3, 3)
    pose_rotmat = rotmats[:, 9:]
    id_flat = jnp.tile(jnp.eye(3, dtype=jnp.float32).reshape(-1),
                       (NUM_JOINTS - 1,))
    pose_map = pose_rotmat - id_flat

    v_shaped = (params['v_template'][None]
                + jnp.einsum('bk,vck->bvc', betas, params['shapedirs']))
    th_j = jnp.einsum('jv,bvc->bjc', params['J_regressor'], v_shaped)
    v_posed = v_shaped + jnp.einsum('bp,vcp->bvc', pose_map, params['posedirs'])

    def with_zeros(m34):
        pad = jnp.broadcast_to(jnp.array([0., 0., 0., 1.], jnp.float32),
                               (B, 1, 4))
        return jnp.concatenate([m34, pad], axis=1)

    results = [with_zeros(jnp.concatenate(
        [root_rot, th_j[:, 0].reshape(B, 3, 1)], axis=2))]
    for i in range(1, NUM_JOINTS):
        rot = pose_rotmat[:, (i - 1) * 9:i * 9].reshape(B, 3, 3)
        jj = th_j[:, i].reshape(B, 3, 1)
        pj = th_j[:, SMPL_PARENTS[i]].reshape(B, 3, 1)
        rel = with_zeros(jnp.concatenate([rot, jj - pj], axis=2))
        results.append(jnp.matmul(results[SMPL_PARENTS[i]], rel))
    glob = jnp.stack(results, axis=1)                              # (B,24,4,4)

    j_h = jnp.concatenate([th_j, jnp.zeros((B, NUM_JOINTS, 1), jnp.float32)],
                          axis=2)
    tmp = jnp.einsum('bjrc,bjc->bjr', glob, j_h)
    A = glob - jnp.concatenate(
        [jnp.zeros((B, NUM_JOINTS, 4, 3), jnp.float32), tmp[..., None]], axis=3)

    T = jnp.einsum('bjrc,jv->brcv', A, params['weights'].T)        # (B,4,4,V)
    rest = jnp.concatenate([jnp.transpose(v_posed, (0, 2, 1)),
                            jnp.ones((B, 1, V), jnp.float32)], axis=1)
    th_verts = jnp.transpose(jnp.sum(T * rest[:, None], axis=2),
                             (0, 2, 1))[:, :, :3]
    th_jtr = glob[:, :, :3, 3]
    return _apply_trans(th_verts, th_jtr, trans, center_idx)


# ----------------------------------------------------------------------------
if __name__ == "__main__":
    B, V = 2, 256
    key = jax.random.PRNGKey(0)
    ks = jax.random.split(key, 8)

    # Synthetic deterministic SMPL parameters (replace the pickled model).
    params = {
        'v_template': jax.random.normal(ks[0], (V, 3), jnp.float32) * 0.5,
        'shapedirs': jax.random.normal(ks[1], (V, 3, NUM_BETAS), jnp.float32) * 0.01,
        'posedirs': jax.random.normal(ks[2], (V, 3, NUM_POSEDIRS), jnp.float32) * 0.001,
    }
    Jr = jax.random.uniform(ks[3], (NUM_JOINTS, V), jnp.float32)
    params['J_regressor'] = Jr / jnp.sum(Jr, axis=1, keepdims=True)
    W = jax.random.uniform(ks[4], (V, NUM_JOINTS), jnp.float32)
    params['weights'] = W / jnp.sum(W, axis=1, keepdims=True)

    pose = jax.random.normal(ks[5], (B, 72), jnp.float32) * 0.3
    betas = jax.random.normal(ks[6], (B, 10), jnp.float32)
    trans = jax.random.normal(ks[7], (B, 3), jnp.float32) * 0.1

    prepared = prepare_smpl_params(params)   # bf16 planar dirs, (10,72) j_dirs

    fwd = jax.jit(smpl_forward, static_argnames=('center_idx', 'tile_v'))
    # tile_v=128 -> grid=(2,), exercising the V-tiled, parallel grid path.
    verts, jtr = fwd(pose, betas, trans, prepared, center_idx=None, tile_v=128)
    jax.block_until_ready((verts, jtr))

    ref = jax.jit(smpl_forward_ref, static_argnames=('center_idx',))
    verts_ref, jtr_ref = ref(pose, betas, trans, params, center_idx=None)
    jax.block_until_ready((verts_ref, jtr_ref))

    assert verts.shape == (B, V, 3) and jtr.shape == (B, NUM_JOINTS, 3)
    assert bool(jnp.all(jnp.isfinite(verts))) and bool(jnp.all(jnp.isfinite(jtr)))
    # Joints never touch the bf16 basis -> tight tolerance; vertices use the
    # bf16 blend-shape basis -> ~1e-3 tolerance vs the f32 reference.
    np.testing.assert_allclose(np.asarray(jtr), np.asarray(jtr_ref),
                               rtol=1e-4, atol=1e-4)
    np.testing.assert_allclose(np.asarray(verts), np.asarray(verts_ref),
                               rtol=5e-3, atol=2e-3)
    print("KERNEL_OK")
</pallas_src>

<mosaic_0001>
module attributes {stable_mosaic.version = 11 : i64} {
  func.func @_smpl_lbs_kernel(%arg0: i32, %arg1: memref<8x217xbf16, #tpu.memory_space<vmem>>, %arg2: memref<3x217x128xbf16, #tpu.memory_space<vmem>>, %arg3: memref<3x128xf32, #tpu.memory_space<vmem>>, %arg4: memref<128x24xf32, #tpu.memory_space<vmem>>, %arg5: memref<24x128xf32, #tpu.memory_space<vmem>>, %arg6: memref<3x8x128xf32, #tpu.memory_space<vmem>>) attributes {dimension_semantics = [#tpu.dimension_semantics<parallel>], iteration_bounds = array<i64: 2>, scalar_prefetch = 0 : i64, scratch_operands = 0 : i64, tpu.core_type = #tpu.core_type<tc>, window_params = [{pipeline_mode = #tpu.pipeline_mode<synchronous>, transform_indices = @transform_0, window_bounds = array<i64: 8, 217>}, {transform_indices = @transform_1, window_bounds = array<i64: 3, 217, 128>}, {transform_indices = @transform_2, window_bounds = array<i64: 3, 128>}, {pipeline_mode = #tpu.pipeline_mode<synchronous>, transform_indices = @transform_3, window_bounds = array<i64: 128, 24>}, {transform_indices = @transform_4, window_bounds = array<i64: 24, 128>}, {transform_indices = @transform_5, window_bounds = array<i64: 3, 8, 128>}]} {
    %c0 = arith.constant 0 : index
    %c0_0 = arith.constant 0 : index
    %0 = vector.load %arg1[%c0, %c0_0] : memref<8x217xbf16, #tpu.memory_space<vmem>>, vector<8x217xbf16>
    %c0_1 = arith.constant 0 : index
    %c0_2 = arith.constant 0 : index
    %1 = vector.load %arg3[%c0_1, %c0_2] : memref<3x128xf32, #tpu.memory_space<vmem>>, vector<1x128xf32>
    %c0_3 = arith.constant 0 : index
    %c0_4 = arith.constant 0 : index
    %c0_5 = arith.constant 0 : index
    %2 = vector.load %arg2[%c0_3, %c0_4, %c0_5] : memref<3x217x128xbf16, #tpu.memory_space<vmem>>, vector<1x217x128xbf16>
    %3 = vector.shape_cast %2 : vector<1x217x128xbf16> to vector<217x128xbf16>
    %cst = arith.constant dense<0.000000e+00> : vector<8x128xf32>
    %4 = tpu.matmul %0, %3, %cst {dimension_numbers = #tpu.dot_dimension_numbers<[1], [0], [0], [1], [0, 0, 1, 1], [], []>} : vector<8x217xbf16>, vector<217x128xbf16>, vector<8x128xf32> -> vector<8x128xf32>
    %5 = vector.broadcast %1 : vector<1x128xf32> to vector<8x128xf32>
    %6 = arith.addf %5, %4 : vector<8x128xf32>
    %c1 = arith.constant 1 : index
    %c0_6 = arith.constant 0 : index
    %7 = vector.load %arg3[%c1, %c0_6] : memref<3x128xf32, #tpu.memory_space<vmem>>, vector<1x128xf32>
    %c1_7 = arith.constant 1 : index
    %c0_8 = arith.constant 0 : index
    %c0_9 = arith.constant 0 : index
    %8 = vector.load %arg2[%c1_7, %c0_8, %c0_9] : memref<3x217x128xbf16, #tpu.memory_space<vmem>>, vector<1x217x128xbf16>
    %9 = vector.shape_cast %8 : vector<1x217x128xbf16> to vector<217x128xbf16>
    %cst_10 = arith.constant dense<0.000000e+00> : vector<8x128xf32>
    %10 = tpu.matmul %0, %9, %cst_10 {dimension_numbers = #tpu.dot_dimension_numbers<[1], [0], [0], [1], [0, 0, 1, 1], [], []>} : vector<8x217xbf16>, vector<217x128xbf16>, vector<8x128xf32> -> vector<8x128xf32>
    %11 = vector.broadcast %7 : vector<1x128xf32> to vector<8x128xf32>
    %12 = arith.addf %11, %10 : vector<8x128xf32>
    %c2 = arith.constant 2 : index
    %c0_11 = arith.constant 0 : index
    %13 = vector.load %arg3[%c2, %c0_11] : memref<3x128xf32, #tpu.memory_space<vmem>>, vector<1x128xf32>
    %c2_12 = arith.constant 2 : index
    %c0_13 = arith.constant 0 : index
    %c0_14 = arith.constant 0 : index
    %14 = vector.load %arg2[%c2_12, %c0_13, %c0_14] : memref<3x217x128xbf16, #tpu.memory_space<vmem>>, vector<1x217x128xbf16>
    %15 = vector.shape_cast %14 : vector<1x217x128xbf16> to vector<217x128xbf16>
    %cst_15 = arith.constant dense<0.000000e+00> : vector<8x128xf32>
    %16 = tpu.matmul %0, %15, %cst_15 {dimension_numbers = #tpu.dot_dimension_numbers<[1], [0], [0], [1], [0, 0, 1, 1], [], []>} : vector<8x217xbf16>, vector<217x128xbf16>, vector<8x128xf32> -> vector<8x128xf32>
    %17 = vector.broadcast %13 : vector<1x128xf32> to vector<8x128xf32>
    %18 = arith.addf %17, %16 : vector<8x128xf32>
    %c0_16 = arith.constant 0 : index
    %c0_17 = arith.constant 0 : index
    %19 = vector.load %arg4[%c0_16, %c0_17] : memref<128x24xf32, #tpu.memory_space<vmem>>, vector<128x24xf32>
    %c0_18 = arith.constant 0 : index
    %c0_19 = arith.constant 0 : index
    %20 = vector.load %arg5[%c0_18, %c0_19] : memref<24x128xf32, #tpu.memory_space<vmem>>, vector<24x128xf32>
    %cst_20 = arith.constant dense<0.000000e+00> : vector<128x128xf32>
    %21 = tpu.matmul %19, %20, %cst_20 {dimension_numbers = #tpu.dot_dimension_numbers<[1], [0], [0], [1], [0, 0, 1, 1], [], []>} : vector<128x24xf32>, vector<24x128xf32>, vector<128x128xf32> -> vector<128x128xf32>
    %22 = vector.extract_strided_slice %21 {offsets = [24, 0], sizes = [8, 128], strides = [1, 1]} : vector<128x128xf32> to vector<8x128xf32>
    %23 = vector.extract_strided_slice %21 {offsets = [0, 0], sizes = [8, 128], strides = [1, 1]} : vector<128x128xf32> to vector<8x128xf32>
    %24 = arith.mulf %23, %6 : vector<8x128xf32>
    %25 = arith.addf %22, %24 : vector<8x128xf32>
    %26 = vector.extract_strided_slice %21 {offsets = [8, 0], sizes = [8, 128], strides = [1, 1]} : vector<128x128xf32> to vector<8x128xf32>
    %27 = arith.mulf %26, %12 : vector<8x128xf32>
    %28 = arith.addf %25, %27 : vector<8x128xf32>
    %29 = vector.extract_strided_slice %21 {offsets = [16, 0], sizes = [8, 128], strides = [1, 1]} : vector<128x128xf32> to vector<8x128xf32>
    %30 = arith.mulf %29, %18 : vector<8x128xf32>
    %31 = arith.addf %28, %30 : vector<8x128xf32>
    %c0_21 = arith.constant 0 : index
    %c0_22 = arith.constant 0 : index
    %c0_23 = arith.constant 0 : index
    %32 = vector.load %arg6[%c0_21, %c0_22, %c0_23] : memref<3x8x128xf32, #tpu.memory_space<vmem>>, vector<1x8x128xf32>
    %33 = vector.shape_cast %32 : vector<1x8x128xf32> to vector<8x128xf32>
    %34 = vector.shape_cast %31 : vector<8x128xf32> to vector<1x8x128xf32>
    tpu.vector_store %arg6[%c0_21, %c0_22, %c0_23], %34 {strides = array<i32>} : memref<3x8x128xf32, #tpu.memory_space<vmem>>, vector<1x8x128xf32>,
    %35 = vector.extract_strided_slice %21 {offsets = [56, 0], sizes = [8, 128], strides = [1, 1]} : vector<128x128xf32> to vector<8x128xf32>
    %36 = vector.extract_strided_slice %21 {offsets = [32, 0], sizes = [8, 128], strides = [1, 1]} : vector<128x128xf32> to vector<8x128xf32>
    %37 = arith.mulf %36, %6 : vector<8x128xf32>
    %38 = arith.addf %35, %37 : vector<8x128xf32>
    %39 = vector.extract_strided_slice %21 {offsets = [40, 0], sizes = [8, 128], strides = [1, 1]} : vector<128x128xf32> to vector<8x128xf32>
    %40 = arith.mulf %39, %12 : vector<8x128xf32>
    %41 = arith.addf %38, %40 : vector<8x128xf32>
    %42 = vector.extract_strided_slice %21 {offsets = [48, 0], sizes = [8, 128], strides = [1, 1]} : vector<128x128xf32> to vector<8x128xf32>
    %43 = arith.mulf %42, %18 : vector<8x128xf32>
    %44 = arith.addf %41, %43 : vector<8x128xf32>
    %c1_24 = arith.constant 1 : index
    %c0_25 = arith.constant 0 : index
    %c0_26 = arith.constant 0 : index
    %45 = vector.load %arg6[%c1_24, %c0_25, %c0_26] : memref<3x8x128xf32, #tpu.memory_space<vmem>>, vector<1x8x128xf32>
    %46 = vector.shape_cast %45 : vector<1x8x128xf32> to vector<8x128xf32>
    %47 = vector.shape_cast %44 : vector<8x128xf32> to vector<1x8x128xf32>
    tpu.vector_store %arg6[%c1_24, %c0_25, %c0_26], %47 {strides = array<i32>} : memref<3x8x128xf32, #tpu.memory_space<vmem>>, vector<1x8x128xf32>,
    %48 = vector.extract_strided_slice %21 {offsets = [88, 0], sizes = [8, 128], strides = [1, 1]} : vector<128x128xf32> to vector<8x128xf32>
    %49 = vector.extract_strided_slice %21 {offsets = [64, 0], sizes = [8, 128], strides = [1, 1]} : vector<128x128xf32> to vector<8x128xf32>
    %50 = arith.mulf %49, %6 : vector<8x128xf32>
    %51 = arith.addf %48, %50 : vector<8x128xf32>
    %52 = vector.extract_strided_slice %21 {offsets = [72, 0], sizes = [8, 128], strides = [1, 1]} : vector<128x128xf32> to vector<8x128xf32>
    %53 = arith.mulf %52, %12 : vector<8x128xf32>
    %54 = arith.addf %51, %53 : vector<8x128xf32>
    %55 = vector.extract_strided_slice %21 {offsets = [80, 0], sizes = [8, 128], strides = [1, 1]} : vector<128x128xf32> to vector<8x128xf32>
    %56 = arith.mulf %55, %18 : vector<8x128xf32>
    %57 = arith.addf %54, %56 : vector<8x128xf32>
    %c2_27 = arith.constant 2 : index
    %c0_28 = arith.constant 0 : index
    %c0_29 = arith.constant 0 : index
    %58 = vector.load %arg6[%c2_27, %c0_28, %c0_29] : memref<3x8x128xf32, #tpu.memory_space<vmem>>, vector<1x8x128xf32>
    %59 = vector.shape_cast %58 : vector<1x8x128xf32> to vector<8x128xf32>
    %60 = vector.shape_cast %57 : vector<8x128xf32> to vector<1x8x128xf32>
    tpu.vector_store %arg6[%c2_27, %c0_28, %c0_29], %60 {strides = array<i32>} : memref<3x8x128xf32, #tpu.memory_space<vmem>>, vector<1x8x128xf32>,
    return
  }
  func.func @transform_0(%arg0: i32) -> (i32, i32) {
    %c0_i32 = arith.constant 0 : i32
    %c0_i32_0 = arith.constant 0 : i32
    %c0_i32_1 = arith.constant 0 : i32
    return %c0_i32, %c0_i32_0 : i32, i32
  }
  func.func @transform_1(%arg0: i32) -> (i32, i32, i32) {
    %c0_i32 = arith.constant 0 : i32
    %c0_i32_0 = arith.constant 0 : i32
    %c0_i32_1 = arith.constant 0 : i32
    return %c0_i32, %c0_i32_0, %arg0 : i32, i32, i32
  }
  func.func @transform_2(%arg0: i32) -> (i32, i32) {
    %c0_i32 = arith.constant 0 : i32
    %c0_i32_0 = arith.constant 0 : i32
    return %c0_i32, %arg0 : i32, i32
  }
  func.func @transform_3(%arg0: i32) -> (i32, i32) {
    %c0_i32 = arith.constant 0 : i32
    %c0_i32_0 = arith.constant 0 : i32
    %c0_i32_1 = arith.constant 0 : i32
    return %c0_i32, %c0_i32_0 : i32, i32
  }
  func.func @transform_4(%arg0: i32) -> (i32, i32) {
    %c0_i32 = arith.constant 0 : i32
    %c0_i32_0 = arith.constant 0 : i32
    return %c0_i32, %arg0 : i32, i32
  }
  func.func @transform_5(%arg0: i32) -> (i32, i32, i32) {
    %c0_i32 = arith.constant 0 : i32
    %c0_i32_0 = arith.constant 0 : i32
    %c0_i32_1 = arith.constant 0 : i32
    return %c0_i32, %c0_i32_0, %arg0 : i32, i32, i32
  }
}

</mosaic_0001>

<bundles_post_ra>
// kernel: tile.6
= control target key start
LH: loop header
LB: loop body
LE: loop exit
PB: predicated region body
PF: predicated region fallthrough
CT: control target
= control target key end

     0   :  { %s34_s0 = inlined_call_operand.vmem [shape: f32[9], index: 0, kind: input, shape index: {}]   ;;  %s35_s1 = inlined_call_operand.vmem [shape: f32[23,9], index: 1, kind: output, shape index: {}]  }
   0x1   :  { %v4_v0 = vld [vmem:[%s34_s0] ss:$0 sm:$0xff] }
   0x2   :  { %5 = vst [vmem:[%s35_s1] sm:$0xff] %v4_v0  ;;  %10 = vst [vmem:[%s35_s1 + $0x8] sm:$0xff] %v4_v0 }
   0x3   :  { %11 = vst [vmem:[%s35_s1 + $0x10] sm:$0xff] %v4_v0 }

// kernel: sub.25
= control target key start
LH: loop header
LB: loop body
LE: loop exit
PB: predicated region body
PF: predicated region fallthrough
CT: control target
= control target key end

     0   :  { %vm9_vm0 = vcmask 15360   ;;  %s203_s10 = smov 108   ;;  %s204_s15 = smov 126   ;;  %vm3_vm1 = vcmask 72704   ;;  %vm13_vm2 = vcmask 56320   ;;  %vm16_vm3 = vcmask 1048560   ;;  %s310_s0 = inlined_call_operand.vmem [shape: f32[23,9], index: 0, kind: input, shape index: {}]   ;;  %s311_s1 = inlined_call_operand.vmem [shape: f32[207], index: 1, kind: output, shape index: {}]  }
   0x1   :  { %v161_v0 = vld [vmem:[%s310_s0 + $0xc] sm:$0x1]   ;;  %v158_v1 = vld [vmem:[%s310_s0 + $0xe] sm:$0x1]   ;;  %v162_v4 = vld [vmem:[%s310_s0 + $0xb] sm:$0x1]  }
   0x2   :  { %26 = vrot.lane.b32.xlu1 %v161_v0, %s203_s10  ;;  %v159_v2 = vld [vmem:[%s310_s0 + $0xe] sm:$0x1]   ;;  %v160_v5 = vld [vmem:[%s310_s0 + $0xd] sm:$0x1]   ;;  %s205_s18 = smov 99   ;;  %s206_s21 = smov 117  }
   0x3   :  { %v10_v3 = vsel %vm9_vm0, %v159_v2, %v158_v1  ;;  %v164_v6 = vld [vmem:[%s310_s0 + $0x9] sm:$0x1]   ;;  %v163_v7 = vld [vmem:[%s310_s0 + $0xa] sm:$0x1]   ;;  %s207_s24 = smov 81   ;;  %s208_s27 = smov 90  }
   0x4   :  { %11 = vrot.lane.b32.xlu0 %v10_v3, %s204_s15  ;;  %v166_v8 = vld [vmem:[%s310_s0 + $0x16] sm:$0x1]   ;;  %v165_v9 = vld [vmem:[%s310_s0 + $0x8] sm:$0x1]   ;;  %v2_v10 = vld [vmem:[%s310_s0] sm:$0x1]  }
   0x5   :  { %s209_s3 = smov 70   ;;  %4 = vst.msk [vmem:[#allocation0] sm:$0x1] %vm3_vm1, %v2_v10   ;;  %v168_v11 = vld [vmem:[%s310_s0 + $0x15] sm:$0x1]   ;;  %s210_s6 = smov 72  }
   0x6   :  { %32 = vrot.lane.b32.xlu1 %v162_v4, %s205_s18  ;;  %v167_v12 = vld [vmem:[%s310_s0 + $0x7] sm:$0x1]   ;;  %s211_s9 = smov 61   ;;  %v170_v13 = vld [vmem:[%s310_s0 + $0x14] sm:$0x1]   ;;  %s212_s12 = smov 63  }
   0x7   :  { %v169_v14 = vld [vmem:[%s310_s0 + $0x6] sm:$0x1]   ;;  %s213_s15 = smov 52   ;;  %v172_v15 = vld [vmem:[%s310_s0 + $0x13] sm:$0x1]   ;;  %s214_s18 = smov 54  }
   0x8   :  { %20 = vrot.lane.b32.xlu0 %v160_v5, %s206_s21  ;;  %v171_v16 = vld [vmem:[%s310_s0 + $0x5] sm:$0x1]   ;;  %s215_s21 = smov 43   ;;  %v174_v17 = vld [vmem:[%s310_s0 + $0x12] sm:$0x1]   ;;  %s218_s30 = smov 36  }
   0x9   :  { %v173_v18 = vld [vmem:[%s310_s0 + $0x4] sm:$0x1]   ;;  %v176_v19 = vld [vmem:[%s310_s0 + $0x11] sm:$0x1]   ;;  %v175_v20 = vld [vmem:[%s310_s0 + $0x3] sm:$0x1]  }
   0xa   :  { %44 = vrot.lane.b32.xlu1 %v164_v6, %s207_s24  ;;  %s216_s24 = smov 45   ;;  %s219_s4 = smov 25   ;;  %v178_v21 = vld [vmem:[%s310_s0 + $0x10] sm:$0x1]   ;;  %v177_v22 = vld [vmem:[%s310_s0 + $0x2] sm:$0x1]  }
   0xb   :  { %s220_s7 = smov 27   ;;  %s221_s10 = smov 16   ;;  %v180_v23 = vld [vmem:[%s310_s0 + $0xf] sm:$0x1]   ;;  %v179_v24 = vld [vmem:[%s310_s0 + $0x1] sm:$0x1]  }
   0xc   :  { %38 = vrot.lane.b32.xlu0 %v163_v7, %s208_s27  ;;  %s217_s27 = smov 34   ;;  %s222_s13 = smov 18   ;;  %vm22_vm4 = vcmask 1032104   ;;  %vm28_vm5 = vcmask 958304   ;;  %vm34_vm6 = vcmask 884504   ;;  %vm40_vm7 = vcmask 810704  }
   0xd   :  { %s223_s0 = smov 7   ;;  %s224_s16 = smov 9   ;;  %vm46_vm8 = vcmask 736904   ;;  %vm58_vm9 = vcmask 646704   ;;  %vm52_vm10 = vcmask 663104   ;;  %vm71_vm11 = vcmask 572904  }
   0xe   :  { %56 = vrot.lane.b32.xlu1 %v166_v8, %s209_s3  ;;  %vm65_vm12 = vcmask 589304   ;;  %vm84_vm13 = vcmask 499104   ;;  %vm78_vm14 = vcmask 515504   ;;  %vm97_vm15 = vcmask 425304  }
   0xf   :  { %vm91_vm0 = vcmask 441704   ;;  %vm110_vm1 = vcmask 351504  }
  0x10   :  { %50 = vrot.lane.b32.xlu0 %v165_v9, %s210_s6 }
  0x12   :  { %69 = vrot.lane.b32.xlu1 %v168_v11, %s211_s9 }
  0x14   :  { %63 = vrot.lane.b32.xlu0 %v167_v12, %s212_s12 }
  0x16   :  { %82 = vrot.lane.b32.xlu1 %v170_v13, %s213_s15 }
  0x18   :  { %76 = vrot.lane.b32.xlu0 %v169_v14, %s214_s18 }
  0x1a   :  { %95 = vrot.lane.b32.xlu1 %v172_v15, %s215_s21 }
  0x1c   :  { %89 = vrot.lane.b32.xlu0 %v171_v16, %s216_s24 }
  0x1e   :  { %108 = vrot.lane.b32.xlu1 %v174_v17, %s217_s27 }
  0x20   :  { %102 = vrot.lane.b32.xlu0 %v173_v18, %s218_s30 }
  0x22   :  { %121 = vrot.lane.b32.xlu1 %v176_v19, %s219_s4 }
  0x24   :  { %115 = vrot.lane.b32.xlu0 %v175_v20, %s220_s7 }
  0x26   :  { %134 = vrot.lane.b32.xlu1 %v178_v21, %s221_s10 }
  0x28   :  { %128 = vrot.lane.b32.xlu0 %v177_v22, %s222_s13 }
  0x2a   :  { %147 = vrot.lane.b32.xlu1 %v180_v23, %s223_s0 }
  0x2c   :  { %141 = vrot.lane.b32.xlu0 %v179_v24, %s224_s16 }
  0x74   :  { %v27_v25 = vpop.permute.xlu1 %26  }
  0x76   :  { %v12_v26 = vpop.permute.xlu0 %11  }
  0x77   :  { %15 = vst.msk [vmem:[#allocation0 + $0x1] sm:$0x1] %vm13_vm2, %v12_v26   ;;  %vm104_vm2 = vcmask 367904  }
  0x78   :  { %17 = vst.msk [vmem:[#allocation0] sm:$0x1] %vm16_vm3, %v12_v26   ;;  %v33_v27 = vpop.permute.xlu1 %32   ;;  %vm123_vm3 = vcmask 277704  }
  0x7a   :  { %v21_v28 = vpop.permute.xlu0 %20  }
  0x7b   :  { %23 = vst.msk [vmem:[#allocation0] sm:$0x1] %vm22_vm4, %v21_v28   ;;  %vm117_vm4 = vcmask 294104  }
  0x7c   :  { %29 = vst.msk [vmem:[#allocation0] sm:$0x1] %vm28_vm5, %v27_v25   ;;  %v45_v29 = vpop.permute.xlu1 %44   ;;  %vm136_vm5 = vcmask 203904  }
  0x7d   :  { %35 = vst.msk [vmem:[#allocation0] sm:$0x1] %vm34_vm6, %v33_v27   ;;  %vm130_vm6 = vcmask 220304  }
  0x7e   :  { %v39_v30 = vpop.permute.xlu0 %38  }
  0x7f   :  { %41 = vst.msk [vmem:[#allocation0] sm:$0x1] %vm40_vm7, %v39_v30   ;;  %vm149_vm7 = vcmask 130104  }
  0x80   :  { %47 = vst.msk [vmem:[#allocation0] sm:$0x1] %vm46_vm8, %v45_v29   ;;  %v57_v31 = vpop.permute.xlu1 %56   ;;  %vm143_vm8 = vcmask 146504  }
  0x81   :  { %60 = vst.msk [vmem:[#allocation0 + $0x1] sm:$0x1] %vm58_vm9, %v57_v31  }
  0x82   :  { %v51_v32 = vpop.permute.xlu0 %50  }
  0x83   :  { %53 = vst.msk [vmem:[#allocation0] sm:$0x1] %vm52_vm10, %v51_v32  }
  0x84   :  { %v70_v33 = vpop.permute.xlu1 %69  }
  0x85   :  { %73 = vst.msk [vmem:[#allocation0 + $0x1] sm:$0x1] %vm71_vm11, %v70_v33  }
  0x86   :  { %v64_v34 = vpop.permute.xlu0 %63  }
  0x87   :  { %66 = vst.msk [vmem:[#allocation0] sm:$0x1] %vm65_vm12, %v64_v34  }
  0x88   :  { %v83_v35 = vpop.permute.xlu1 %82  }
  0x89   :  { %86 = vst.msk [vmem:[#allocation0 + $0x1] sm:$0x1] %vm84_vm13, %v83_v35  }
  0x8a   :  { %v77_v36 = vpop.permute.xlu0 %76  }
  0x8b   :  { %79 = vst.msk [vmem:[#allocation0] sm:$0x1] %vm78_vm14, %v77_v36  }
  0x8c   :  { %v96_v37 = vpop.permute.xlu1 %95  }
  0x8d   :  { %99 = vst.msk [vmem:[#allocation0 + $0x1] sm:$0x1] %vm97_vm15, %v96_v37  }
  0x8e   :  { %v90_v38 = vpop.permute.xlu0 %89  }
  0x8f   :  { %92 = vst.msk [vmem:[#allocation0] sm:$0x1] %vm91_vm0, %v90_v38  }
  0x90   :  { %v109_v39 = vpop.permute.xlu1 %108  }
  0x91   :  { %112 = vst.msk [vmem:[#allocation0 + $0x1] sm:$0x1] %vm110_vm1, %v109_v39  }
  0x92   :  { %v103_v40 = vpop.permute.xlu0 %102  }
  0x93   :  { %105 = vst.msk [vmem:[#allocation0] sm:$0x1] %vm104_vm2, %v103_v40  }
  0x94   :  { %v122_v41 = vpop.permute.xlu1 %121  }
  0x95   :  { %125 = vst.msk [vmem:[#allocation0 + $0x1] sm:$0x1] %vm123_vm3, %v122_v41  }
  0x96   :  { %v116_v42 = vpop.permute.xlu0 %115  }
  0x97   :  { %118 = vst.msk [vmem:[#allocation0] sm:$0x1] %vm117_vm4, %v116_v42  }
  0x98   :  { %v135_v43 = vpop.permute.xlu1 %134  }
  0x99   :  { %138 = vst.msk [vmem:[#allocation0 + $0x1] sm:$0x1] %vm136_vm5, %v135_v43  }
  0x9a   :  { %v129_v44 = vpop.permute.xlu0 %128  }
  0x9b   :  { %131 = vst.msk [vmem:[#allocation0] sm:$0x1] %vm130_vm6, %v129_v44  }
  0x9c   :  { %v148_v45 = vpop.permute.xlu1 %147  }
  0x9d   :  { %151 = vst.msk [vmem:[#allocation0 + $0x1] sm:$0x1] %vm149_vm7, %v148_v45  }
  0x9e   :  { %v142_v46 = vpop.permute.xlu0 %141  }
  0x9f   :  { %144 = vst.msk [vmem:[#allocation0] sm:$0x1] %vm143_vm8, %v142_v46  }
  0xa6   :  { %v155_v47 = vld [vmem:[#allocation0] sm:$0x3] }
  0xa7   :  { %157 = vst [vmem:[%s311_s1] sm:$0x3] %v155_v47 }

// kernel: smpl_forward.1
= control target key start
LH: loop header
LB: loop body
LE: loop exit
PB: predicated region body
PF: predicated region fallthrough
CT: control target
= control target key end

     0   :  { %s1854_s18 = smov 0   ;;  %s1856_s19 = smov 0   ;;  %s2294_s0 = inlined_call_operand.vmem [shape: bf16[8,217], index: 0, kind: input, shape index: {}]   ;;  %s2295_s1 = inlined_call_operand.vmem [shape: bf16[3,217,256], index: 1, kind: input, shape index: {}]   ;;  %s2296_s2 = inlined_call_operand.vmem [shape: f32[3,256], index: 2, kind: input, shape index: {}]   ;;  %s2297_s3 = inlined_call_operand.vmem [shape: f32[128,24], index: 3, kind: input, shape index: {}]   ;;  %s2298_s4 = inlined_call_operand.vmem [shape: f32[24,256], index: 4, kind: input, shape index: {}]   ;;  %s2299_s5 = inlined_call_operand.vmem [shape: f32[3,8,256], index: 5, kind: output, shape index: {}]  }
   0x1   :  { %s1858_s20 = smov 0  }
   0x2 LB: > { %s1870_s21 = sadd.s32 4294967295, %s1820_s20   ;;  %s1873_s22 = sadd.s32 1, %s1820_s20   ;;  %s1820_s20 = sphi %s1858_s20, %s2304_s20   ;;  %s1816_s19 = sphi %s1856_s19, %s2303_s19   ;;  %s1812_s18 = sphi %s1854_s18, %s2302_s18  }
   0x3   : > { %s40_s23 = ssub.s32 %s1820_s20, %s1873_s22  ;;  %s43_s24 = sadd.s32 1, %s1816_s19 }
   0x4   : > { %p41_p0 = scmp.eq.s32.totalorder %s40_s23, 0  ;;  %p50_p1 = scmp.ne.s32.totalorder %s1816_s19, %s1812_s18 }
   0x5   : > { %p51_p2 = scmp.eq.s32.totalorder %s1820_s20, 0  ;;  %p153_p3 = scmp.eq.s32.totalorder %s1870_s21, 1 }
   0x6   : > { %s1883_s25 = scalar_select %p41_p0, %s1816_s19, %s43_s24  }
   0x7   : > { %p1885_p4 = por %p51_p2, %p50_p1  ;;  %p1889_p5 = por %p153_p3, %p50_p1 }
   0x8   : > { %p1539_p6 = scmp.ge.s32.totalorder %s1820_s20, 2 }
   0xa   : > { %181 = sbr.rel (%p1539_p6) target bundleno = 84 (0x54), region = 24 }
  0x11   : > { %184 = sbr.rel (!%p1885_p4) target bundleno = 77 (0x4d), region = 28  ;;  %s186_s28 = sand.u32 (%p1885_p4), 1, %s1816_s19  }
  0x12   : > { %s1540_s29 = sshll.u32 (%p1885_p4), %s1820_s20, 2  ;;  %s1724_s30 = smul.u32 (%p1885_p4), 336, %s186_s28 }
  0x13   : > { %s1901_s8 = scalar_lea.vmem (%p1885_p4), %s2295_s1, %s1540_s29 }
  0x14   : > { %v206_v0 = vld [vmem:[%s1901_s8] sm:$0xf] (%p1885_p4)  ;;  %v208_v1 = vld [vmem:[%s1901_s8 + $0x8] sm:$0xf] (%p1885_p4)  ;;  %v210_v2 = vld [vmem:[%s1901_s8 + $0x10] sm:$0xf] (%p1885_p4) }
  0x15   : > { %v212_v3 = vld [vmem:[%s1901_s8 + $0x18] sm:$0xf] (%p1885_p4)  ;;  %v214_v4 = vld [vmem:[%s1901_s8 + $0x20] sm:$0xf] (%p1885_p4)  ;;  %s1908_s9 = scalar_lea.vmem (%p1885_p4), [#allocation2], %s1724_s30 }
  0x16   : > { %207 = vst [vmem:[%s1908_s9] sm:$0xf] (%p1885_p4), %v206_v0  ;;  %209 = vst [vmem:[%s1908_s9 + $0x4] sm:$0xf] (%p1885_p4), %v208_v1  ;;  %v216_v5 = vld [vmem:[%s1901_s8 + $0x28] sm:$0xf] (%p1885_p4) }
  0x17   : > { %211 = vst [vmem:[%s1908_s9 + $0x8] sm:$0xf] (%p1885_p4), %v210_v2  ;;  %213 = vst [vmem:[%s1908_s9 + $0xc] sm:$0xf] (%p1885_p4), %v212_v3  ;;  %v218_v6 = vld [vmem:[%s1901_s8 + $0x30] sm:$0xf] (%p1885_p4) }
  0x18   : > { %215 = vst [vmem:[%s1908_s9 + $0x10] sm:$0xf] %v214_v4  ;;  %v220_v7 = vld [vmem:[%s1901_s8 + $0x38] sm:$0xf]  ;;  %217 = vst [vmem:[%s1908_s9 + $0x14] sm:$0xf] %v216_v5 }
  0x19   : > { %219 = vst [vmem:[%s1908_s9 + $0x18] sm:$0xf] %v218_v6  ;;  %221 = vst [vmem:[%s1908_s9 + $0x1c] sm:$0xf] %v220_v7  ;;  %v222_v8 = vld [vmem:[%s1901_s8 + $0x40] sm:$0xf] }
  0x1a   : > { %v224_v9 = vld [vmem:[%s1901_s8 + $0x48] sm:$0xf]  ;;  %v226_v10 = vld [vmem:[%s1901_s8 + $0x50] sm:$0xf]  ;;  %223 = vst [vmem:[%s1908_s9 + $0x20] sm:$0xf] %v222_v8 }
  0x1b   : > { %225 = vst [vmem:[%s1908_s9 + $0x24] sm:$0xf] %v224_v9  ;;  %227 = vst [vmem:[%s1908_s9 + $0x28] sm:$0xf] %v226_v10  ;;  %v228_v11 = vld [vmem:[%s1901_s8 + $0x58] sm:$0xf] }
  0x1c   : > { %v230_v12 = vld [vmem:[%s1901_s8 + $0x60] sm:$0xf]  ;;  %v232_v13 = vld [vmem:[%s1901_s8 + $0x68] sm:$0xf]  ;;  %229 = vst [vmem:[%s1908_s9 + $0x2c] sm:$0xf] %v228_v11 }
  0x1d   : > { %231 = vst [vmem:[%s1908_s9 + $0x30] sm:$0xf] %v230_v12  ;;  %233 = vst [vmem:[%s1908_s9 + $0x34] sm:$0xf] %v232_v13  ;;  %v234_v14 = vld [vmem:[%s1901_s8 + $0x70] sm:$0xf] }
  0x1e   : > { %v236_v15 = vld [vmem:[%s1901_s8 + $0x78] sm:$0xf]  ;;  %v238_v16 = vld [vmem:[%s1901_s8 + $0x80] sm:$0xf]  ;;  %235 = vst [vmem:[%s1908_s9 + $0x38] sm:$0xf] %v234_v14 }
  0x1f   : > { %237 = vst [vmem:[%s1908_s9 + $0x3c] sm:$0xf] %v236_v15  ;;  %239 = vst [vmem:[%s1908_s9 + $0x40] sm:$0xf] %v238_v16  ;;  %v240_v17 = vld [vmem:[%s1901_s8 + $0x88] sm:$0xf] }
  0x20   : > { %v242_v18 = vld [vmem:[%s1901_s8 + $0x90] sm:$0xf]  ;;  %v244_v19 = vld [vmem:[%s1901_s8 + $0x98] sm:$0xf]  ;;  %241 = vst [vmem:[%s1908_s9 + $0x44] sm:$0xf] %v240_v17 }
  0x21   : > { %243 = vst [vmem:[%s1908_s9 + $0x48] sm:$0xf] %v242_v18  ;;  %245 = vst [vmem:[%s1908_s9 + $0x4c] sm:$0xf] %v244_v19  ;;  %v246_v20 = vld [vmem:[%s1901_s8 + $0xa0] sm:$0xf] }
  0x22   : > { %v248_v21 = vld [vmem:[%s1901_s8 + $0xa8] sm:$0xf]  ;;  %v250_v22 = vld [vmem:[%s1901_s8 + $0xb0] sm:$0xf]  ;;  %247 = vst [vmem:[%s1908_s9 + $0x50] sm:$0xf] %v246_v20 }
  0x23   : > { %249 = vst [vmem:[%s1908_s9 + $0x54] sm:$0xf] %v248_v21  ;;  %251 = vst [vmem:[%s1908_s9 + $0x58] sm:$0xf] %v250_v22  ;;  %v252_v23 = vld [vmem:[%s1901_s8 + $0xb8] sm:$0xf] }
  0x24   : > { %v254_v24 = vld [vmem:[%s1901_s8 + $0xc0] sm:$0xf]  ;;  %v256_v25 = vld [vmem:[%s1901_s8 + $0xc8] sm:$0xf]  ;;  %253 = vst [vmem:[%s1908_s9 + $0x5c] sm:$0xf] %v252_v23 }
  0x25   : > { %255 = vst [vmem:[%s1908_s9 + $0x60] sm:$0xf] %v254_v24  ;;  %257 = vst [vmem:[%s1908_s9 + $0x64] sm:$0xf] %v256_v25  ;;  %v258_v26 = vld [vmem:[%s1901_s8 + $0xd0] sm:$0xf] }
  0x26   : > { %v260_v27 = vld [vmem:[%s1901_s8 + $0xd8] sm:$0xf]  ;;  %v262_v28 = vld [vmem:[%s1901_s8 + $0xe0] sm:$0xf]  ;;  %259 = vst [vmem:[%s1908_s9 + $0x68] sm:$0xf] %v258_v26 }
  0x27   : > { %261 = vst [vmem:[%s1908_s9 + $0x6c] sm:$0xf] %v260_v27  ;;  %263 = vst [vmem:[%s1908_s9 + $0x70] sm:$0xf] %v262_v28  ;;  %v264_v29 = vld [vmem:[%s1901_s8 + $0xe8] sm:$0xf] }
  0x28   : > { %v266_v30 = vld [vmem:[%s1901_s8 + $0xf0] sm:$0xf]  ;;  %v268_v31 = vld [vmem:[%s1901_s8 + $0xf8] sm:$0xf]  ;;  %265 = vst [vmem:[%s1908_s9 + $0x74] sm:$0xf] %v264_v29 }
  0x29   : > { %267 = vst [vmem:[%s1908_s9 + $0x78] sm:$0xf] %v266_v30  ;;  %269 = vst [vmem:[%s1908_s9 + $0x7c] sm:$0xf] %v268_v31  ;;  %v270_v32 = vld [vmem:[%s1901_s8 + $0x100] sm:$0xf] }
  0x2a   : > { %v272_v33 = vld [vmem:[%s1901_s8 + $0x108] sm:$0xf]  ;;  %v274_v34 = vld [vmem:[%s1901_s8 + $0x110] sm:$0xf]  ;;  %271 = vst [vmem:[%s1908_s9 + $0x80] sm:$0xf] %v270_v32 }
  0x2b   : > { %273 = vst [vmem:[%s1908_s9 + $0x84] sm:$0xf] %v272_v33  ;;  %275 = vst [vmem:[%s1908_s9 + $0x88] sm:$0xf] %v274_v34  ;;  %v276_v35 = vld [vmem:[%s1901_s8 + $0x118] sm:$0xf] }
  0x2c   : > { %v278_v36 = vld [vmem:[%s1901_s8 + $0x120] sm:$0xf]  ;;  %v280_v37 = vld [vmem:[%s1901_s8 + $0x128] sm:$0xf]  ;;  %277 = vst [vmem:[%s1908_s9 + $0x8c] sm:$0xf] %v276_v35 }
  0x2d   : > { %279 = vst [vmem:[%s1908_s9 + $0x90] sm:$0xf] %v278_v36  ;;  %281 = vst [vmem:[%s1908_s9 + $0x94] sm:$0xf] %v280_v37  ;;  %v282_v38 = vld [vmem:[%s1901_s8 + $0x130] sm:$0xf] }
  0x2e   : > { %v284_v39 = vld [vmem:[%s1901_s8 + $0x138] sm:$0xf]  ;;  %v286_v40 = vld [vmem:[%s1901_s8 + $0x140] sm:$0xf]  ;;  %283 = vst [vmem:[%s1908_s9 + $0x98] sm:$0xf] %v282_v38 }
  0x2f   : > { %285 = vst [vmem:[%s1908_s9 + $0x9c] sm:$0xf] %v284_v39  ;;  %287 = vst [vmem:[%s1908_s9 + $0xa0] sm:$0xf] %v286_v40  ;;  %v288_v41 = vld [vmem:[%s1901_s8 + $0x148] sm:$0xf] }
  0x30   : > { %v290_v42 = vld [vmem:[%s1901_s8 + $0x150] sm:$0xf]  ;;  %v292_v43 = vld [vmem:[%s1901_s8 + $0x158] sm:$0xf]  ;;  %289 = vst [vmem:[%s1908_s9 + $0xa4] sm:$0xf] %v288_v41 }
  0x31   : > { %291 = vst [vmem:[%s1908_s9 + $0xa8] sm:$0xf] %v290_v42  ;;  %293 = vst [vmem:[%s1908_s9 + $0xac] sm:$0xf] %v292_v43  ;;  %v294_v44 = vld [vmem:[%s1901_s8 + $0x160] sm:$0xf] }
  0x32   : > { %v296_v45 = vld [vmem:[%s1901_s8 + $0x168] sm:$0xf]  ;;  %v298_v46 = vld [vmem:[%s1901_s8 + $0x170] sm:$0xf]  ;;  %295 = vst [vmem:[%s1908_s9 + $0xb0] sm:$0xf] %v294_v44 }
  0x33   : > { %297 = vst [vmem:[%s1908_s9 + $0xb4] sm:$0xf] %v296_v45  ;;  %299 = vst [vmem:[%s1908_s9 + $0xb8] sm:$0xf] %v298_v46  ;;  %v300_v47 = vld [vmem:[%s1901_s8 + $0x178] sm:$0xf] }
  0x34   : > { %v302_v48 = vld [vmem:[%s1901_s8 + $0x180] sm:$0xf]  ;;  %v304_v49 = vld [vmem:[%s1901_s8 + $0x188] sm:$0xf]  ;;  %301 = vst [vmem:[%s1908_s9 + $0xbc] sm:$0xf] %v300_v47 }
  0x35   : > { %303 = vst [vmem:[%s1908_s9 + $0xc0] sm:$0xf] %v302_v48  ;;  %305 = vst [vmem:[%s1908_s9 + $0xc4] sm:$0xf] %v304_v49  ;;  %v306_v50 = vld [vmem:[%s1901_s8 + $0x190] sm:$0xf] }
  0x36   : > { %v308_v51 = vld [vmem:[%s1901_s8 + $0x198] sm:$0xf]  ;;  %v310_v52 = vld [vmem:[%s1901_s8 + $0x1a0] sm:$0xf]  ;;  %307 = vst [vmem:[%s1908_s9 + $0xc8] sm:$0xf] %v306_v50 }
  0x37   : > { %309 = vst [vmem:[%s1908_s9 + $0xcc] sm:$0xf] %v308_v51  ;;  %311 = vst [vmem:[%s1908_s9 + $0xd0] sm:$0xf] %v310_v52  ;;  %v312_v53 = vld [vmem:[%s1901_s8 + $0x1a8] sm:$0xf] }
  0x38   : > { %v314_v54 = vld [vmem:[%s1901_s8 + $0x1b0] sm:$0xf]  ;;  %v316_v55 = vld [vmem:[%s1901_s8 + $0x1b8] sm:$0xf]  ;;  %313 = vst [vmem:[%s1908_s9 + $0xd4] sm:$0xf] %v312_v53 }
  0x39   : > { %315 = vst [vmem:[%s1908_s9 + $0xd8] sm:$0xf] %v314_v54  ;;  %317 = vst [vmem:[%s1908_s9 + $0xdc] sm:$0xf] %v316_v55  ;;  %v318_v56 = vld [vmem:[%s1901_s8 + $0x1c0] sm:$0xf] }
  0x3a   : > { %v320_v57 = vld [vmem:[%s1901_s8 + $0x1c8] sm:$0xf]  ;;  %v322_v58 = vld [vmem:[%s1901_s8 + $0x1d0] sm:$0xf]  ;;  %319 = vst [vmem:[%s1908_s9 + $0xe0] sm:$0xf] %v318_v56 }
  0x3b   : > { %321 = vst [vmem:[%s1908_s9 + $0xe4] sm:$0xf] %v320_v57  ;;  %323 = vst [vmem:[%s1908_s9 + $0xe8] sm:$0xf] %v322_v58  ;;  %v324_v59 = vld [vmem:[%s1901_s8 + $0x1d8] sm:$0xf] }
  0x3c   : > { %v326_v60 = vld [vmem:[%s1901_s8 + $0x1e0] sm:$0xf]  ;;  %v328_v61 = vld [vmem:[%s1901_s8 + $0x1e8] sm:$0xf]  ;;  %325 = vst [vmem:[%s1908_s9 + $0xec] sm:$0xf] %v324_v59 }
  0x3d   : > { %327 = vst [vmem:[%s1908_s9 + $0xf0] sm:$0xf] %v326_v60  ;;  %329 = vst [vmem:[%s1908_s9 + $0xf4] sm:$0xf] %v328_v61  ;;  %v330_v62 = vld [vmem:[%s1901_s8 + $0x1f0] sm:$0xf] }
  0x3e   : > { %v332_v63 = vld [vmem:[%s1901_s8 + $0x1f8] sm:$0xf]  ;;  %v334_v0 = vld [vmem:[%s1901_s8 + $0x200] sm:$0xf]  ;;  %331 = vst [vmem:[%s1908_s9 + $0xf8] sm:$0xf] %v330_v62 }
  0x3f   : > { %333 = vst [vmem:[%s1908_s9 + $0xfc] sm:$0xf] %v332_v63  ;;  %335 = vst [vmem:[%s1908_s9 + $0x100] sm:$0xf] %v334_v0  ;;  %v336_v1 = vld [vmem:[%s1901_s8 + $0x208] sm:$0xf] }
  0x40   : > { %v338_v2 = vld [vmem:[%s1901_s8 + $0x210] sm:$0xf]  ;;  %v340_v3 = vld [vmem:[%s1901_s8 + $0x218] sm:$0xf]  ;;  %337 = vst [vmem:[%s1908_s9 + $0x104] sm:$0xf] %v336_v1 }
  0x41   : > { %339 = vst [vmem:[%s1908_s9 + $0x108] sm:$0xf] %v338_v2  ;;  %341 = vst [vmem:[%s1908_s9 + $0x10c] sm:$0xf] %v340_v3  ;;  %v342_v4 = vld [vmem:[%s1901_s8 + $0x220] sm:$0xf] }
  0x42   : > { %v344_v5 = vld [vmem:[%s1901_s8 + $0x228] sm:$0xf]  ;;  %v346_v6 = vld [vmem:[%s1901_s8 + $0x230] sm:$0xf]  ;;  %343 = vst [vmem:[%s1908_s9 + $0x110] sm:$0xf] %v342_v4 }
  0x43   : > { %345 = vst [vmem:[%s1908_s9 + $0x114] sm:$0xf] %v344_v5  ;;  %347 = vst [vmem:[%s1908_s9 + $0x118] sm:$0xf] %v346_v6  ;;  %v348_v7 = vld [vmem:[%s1901_s8 + $0x238] sm:$0xf] }
  0x44   : > { %v350_v8 = vld [vmem:[%s1901_s8 + $0x240] sm:$0xf]  ;;  %v352_v9 = vld [vmem:[%s1901_s8 + $0x248] sm:$0xf]  ;;  %349 = vst [vmem:[%s1908_s9 + $0x11c] sm:$0xf] %v348_v7 }
  0x45   : > { %351 = vst [vmem:[%s1908_s9 + $0x120] sm:$0xf] %v350_v8  ;;  %353 = vst [vmem:[%s1908_s9 + $0x124] sm:$0xf] %v352_v9  ;;  %v354_v10 = vld [vmem:[%s1901_s8 + $0x250] sm:$0xf] }
  0x46   : > { %v356_v11 = vld [vmem:[%s1901_s8 + $0x258] sm:$0xf]  ;;  %v358_v12 = vld [vmem:[%s1901_s8 + $0x260] sm:$0xf]  ;;  %355 = vst [vmem:[%s1908_s9 + $0x128] sm:$0xf] %v354_v10 }
  0x47   : > { %357 = vst [vmem:[%s1908_s9 + $0x12c] sm:$0xf] %v356_v11  ;;  %359 = vst [vmem:[%s1908_s9 + $0x130] sm:$0xf] %v358_v12  ;;  %v360_v13 = vld [vmem:[%s1901_s8 + $0x268] sm:$0xf] }
  0x48   : > { %v362_v14 = vld [vmem:[%s1901_s8 + $0x270] sm:$0xf]  ;;  %v364_v15 = vld [vmem:[%s1901_s8 + $0x278] sm:$0xf]  ;;  %361 = vst [vmem:[%s1908_s9 + $0x134] sm:$0xf] %v360_v13 }
  0x49   : > { %363 = vst [vmem:[%s1908_s9 + $0x138] sm:$0xf] %v362_v14  ;;  %365 = vst [vmem:[%s1908_s9 + $0x13c] sm:$0xf] %v364_v15  ;;  %v366_v16 = vld [vmem:[%s1901_s8 + $0x280] sm:$0xf] }
  0x4a   : > { %v368_v17 = vld [vmem:[%s1901_s8 + $0x288] sm:$0xf]  ;;  %v370_v18 = vld [vmem:[%s1901_s8 + $0x290] sm:$0xf]  ;;  %367 = vst [vmem:[%s1908_s9 + $0x140] sm:$0xf] %v366_v16 }
  0x4b   : > { %369 = vst [vmem:[%s1908_s9 + $0x144] sm:$0xf] %v368_v17  ;;  %371 = vst [vmem:[%s1908_s9 + $0x148] sm:$0xf] %v370_v18  ;;  %v372_v19 = vld [vmem:[%s1901_s8 + $0x298] sm:$0xf] }
  0x4c   : > { %373 = vst [vmem:[%s1908_s9 + $0x14c] sm:$0xf] %v372_v19 }
  0x4d PF: > { %571 = sbr.rel (!%p1885_p4) target bundleno = 84 (0x54), region = 73  ;;  %s573_s10 = sand.u32 (%p1885_p4), 1, %s1816_s19  }
  0x4e   : > { %s1541_s11 = sshll.u32 (%p1885_p4), %s1820_s20, 3  ;;  %s1725_s12 = smul.u32 (%p1885_p4), 24, %s573_s10 }
  0x4f   : > { %s577_s15 = scalar_lea.vmem (%p1885_p4), %s2298_s4, %s1541_s11 }
  0x50   : > { %v609_v20 = vld [vmem:[%s577_s15] sm:$0xff] (%p1885_p4)  ;;  %v611_v21 = vld [vmem:[%s577_s15 + $0x10] sm:$0xff] (%p1885_p4)  ;;  %s575_s16 = scalar_lea.vmem (%p1885_p4), [#allocation3], %s1725_s12 }
  0x51   : > { %v613_v22 = vld [vmem:[%s577_s15 + $0x20] sm:$0xff] (%p1885_p4)  ;;  %610 = vst [vmem:[%s575_s16] sm:$0xff] (%p1885_p4), %v609_v20  ;;  %612 = vst [vmem:[%s575_s16 + $0x8] sm:$0xff] (%p1885_p4), %v611_v21 }
  0x52   : > { %614 = vst [vmem:[%s575_s16 + $0x10] sm:$0xff] (%p1885_p4), %v613_v22 }
  0x54 PF: > { %p1542_p7 = scmp.ge.s32.totalorder %s1820_s20, 1  ;;  %p619_p8 = scmp.lt.s32.totalorder %s1820_s20, 3 }
  0x56   : > { %p620_p9 = pnand %p1542_p7, %p619_p8 }
  0x57   : > { %s626_s17 = sand.u32 (!%p620_p9), 1, %s1812_s18   ;;  %v2086_v23 = vld [vmem:[%s2294_s0] sm:$0xff] (!%p620_p9)  ;;  %v1822_v24 = vmov (!%p620_p9), 0   ;;  %vm791_vm0 = vcmask (!%p620_p9), 728064   ;;  %vm795_vm1 = vcmask (!%p620_p9), 1043456   ;;  %vm796_vm2 = vcmask (!%p620_p9), 1044480  }
  0x58   : > { %623 = sbr.rel (%p620_p9) target bundleno = 432 (0x1b0), region = 111  ;;  %802 = vmatprep.subr.bf16.mxu0 (!%p620_p9), %v1822_v24  ;;  %963 = vmatprep.subr.bf16.mxu1 (!%p620_p9), %v1822_v24  ;;  %v2094_v25 = vcombine.high (!%p620_p9), %v2086_v23, %v2086_v23  ;;  %v1823_v50 = vmov (!%p620_p9), 65535   ;;  %v2167_v62 = vcombine.low (!%p620_p9), %v2086_v23, %v2086_v23  ;;  %v1169_v1 = vld [vmem:[%s2297_s3] sm:$0xff] (!%p620_p9)  ;;  %vm1188_vm3 = vcmask (!%p620_p9), 195584   ;;  %v1170_v4 = vld [vmem:[%s2297_s3 + $0x8] sm:$0xff] (!%p620_p9)  ;;  %v1171_v5 = vld [vmem:[%s2297_s3 + $0x10] sm:$0xff] (!%p620_p9) }
  0x59   : > { %s1726_s26 = smul.u32 (!%p620_p9), 336, %s626_s17  ;;  %v797_v51 = vsel (!%p620_p9), %vm795_vm1, 4294967295, %v1823_v50  ;;  %v1172_v7 = vld [vmem:[%s2297_s3 + $0x18] sm:$0xff] (!%p620_p9)  ;;  %v1173_v8 = vld [vmem:[%s2297_s3 + $0x20] sm:$0xff] (!%p620_p9)  ;;  %v1174_v10 = vld [vmem:[%s2297_s3 + $0x28] sm:$0xff] (!%p620_p9)  ;;  %p667_p10 = scmp.lt.s32.totalorder (!%p620_p9), %s1870_s21, 1 }
  0x5a   : > { %1560 = vmatprep.mubr.msk.bf16.mxu0 (!%p620_p9), %vm791_vm0, %v2094_v25  ;;  %1604 = vmatprep.mubr.msk.bf16.mxu1 (!%p620_p9), %vm791_vm0, %v2094_v25  ;;  %s2147_s28 = smul.u32 (!%p620_p9), 24, %s626_s17  ;;  %v2156_v55 = vsel (!%p620_p9), %vm796_vm2, %v797_v51, 0  ;;  %v1175_v11 = vld [vmem:[%s2297_s3 + $0x30] sm:$0xff] (!%p620_p9)  ;;  %v1176_v13 = vld [vmem:[%s2297_s3 + $0x38] sm:$0xff] (!%p620_p9)  ;;  %v1177_v14 = vld [vmem:[%s2297_s3 + $0x40] sm:$0xff] (!%p620_p9) }
  0x5b   : > { %s2100_s20 = scalar_lea.vmem (!%p620_p9), [#allocation2], %s1726_s26  ;;  %v1178_v16 = vld [vmem:[%s2297_s3 + $0x48] sm:$0xff] (!%p620_p9)  ;;  %v1179_v17 = vld [vmem:[%s2297_s3 + $0x50] sm:$0xff] (!%p620_p9)  ;;  %v1180_v19 = vld [vmem:[%s2297_s3 + $0x58] sm:$0xff] (!%p620_p9) }
  0x5c   : > { %v1754_v26 = vld [vmem:[%s2100_s20] sm:$0xff] (!%p620_p9)   ;;  %v1755_v27 = vld [vmem:[%s2100_s20 + $0x70] sm:$0xff] (!%p620_p9)   ;;  %v1756_v28 = vld [vmem:[%s2100_s20 + $0x8] sm:$0xff] (!%p620_p9)   ;;  %s635_s18 = scalar_lea.vmem (!%p620_p9), [#allocation3], %s2147_s28  ;;  %s666_s29 = scalar_lea.vmem (!%p620_p9), [#allocation4], %s2147_s28 }
  0x5d   : > { %803 = vmatpush1.bf16.msra.mxu0 (!%p620_p9), %v1754_v26  ;;  %964 = vmatpush1.bf16.msra.mxu1 (!%p620_p9), %v1755_v27  ;;  %v1757_v29 = vld [vmem:[%s2100_s20 + $0x78] sm:$0xff] (!%p620_p9)   ;;  %v1758_v30 = vld [vmem:[%s2100_s20 + $0x10] sm:$0xff] (!%p620_p9)   ;;  %v1759_v31 = vld [vmem:[%s2100_s20 + $0x80] sm:$0xff] (!%p620_p9)  }
  0x5e   : > { %804 = vmatprep.subr.bf16.mxu0 (!%p620_p9), %v1822_v24  ;;  %965 = vmatprep.subr.bf16.mxu1 (!%p620_p9), %v1822_v24  ;;  %v1760_v32 = vld [vmem:[%s2100_s20 + $0x18] sm:$0xff] (!%p620_p9)   ;;  %v1761_v33 = vld [vmem:[%s2100_s20 + $0x88] sm:$0xff] (!%p620_p9)   ;;  %v1762_v34 = vld [vmem:[%s2100_s20 + $0x20] sm:$0xff] (!%p620_p9)  }
  0x5f   : > { %v1763_v35 = vld [vmem:[%s2100_s20 + $0x90] sm:$0xff]   ;;  %v1764_v36 = vld [vmem:[%s2100_s20 + $0x28] sm:$0xff]   ;;  %v1765_v37 = vld [vmem:[%s2100_s20 + $0x98] sm:$0xff]   ;;  %s668_s23 = scalar_select %p667_p10, %s1870_s21, 1 }
  0x60   : > { %v1766_v38 = vld [vmem:[%s2100_s20 + $0x30] sm:$0xff]   ;;  %v1767_v39 = vld [vmem:[%s2100_s20 + $0xa0] sm:$0xff]   ;;  %v1768_v40 = vld [vmem:[%s2100_s20 + $0x38] sm:$0xff]   ;;  %s1668_s30 = sshll.u32 (%p1889_p5), %s1870_s21, 3 }
  0x61   : > { %805 = vmatpush1.bf16.msra.mxu0 %v1756_v28  ;;  %966 = vmatpush1.bf16.msra.mxu1 %v1757_v29  ;;  %v1769_v41 = vld [vmem:[%s2100_s20 + $0xa8] sm:$0xff]   ;;  %v1770_v42 = vld [vmem:[%s2100_s20 + $0x40] sm:$0xff]   ;;  %v1771_v43 = vld [vmem:[%s2100_s20 + $0xb0] sm:$0xff]   ;;  %s1543_s24 = sshll.u32 %s668_s23, 2  ;;  %s1409_s8 = scalar_lea.vmem (%p1889_p5), %s2299_s5, %s1668_s30 }
  0x62   : > { %806 = vmatprep.subr.bf16.mxu0 %v1822_v24  ;;  %967 = vmatprep.subr.bf16.mxu1 %v1822_v24  ;;  %v1772_v44 = vld [vmem:[%s2100_s20 + $0x48] sm:$0xff]   ;;  %v1773_v45 = vld [vmem:[%s2100_s20 + $0xb8] sm:$0xff]   ;;  %v1774_v46 = vld [vmem:[%s2100_s20 + $0x50] sm:$0xff]  }
  0x63   : > { %v1775_v47 = vld [vmem:[%s2100_s20 + $0xc0] sm:$0xff]   ;;  %v1776_v48 = vld [vmem:[%s2100_s20 + $0x58] sm:$0xff]   ;;  %v1777_v49 = vld [vmem:[%s2100_s20 + $0xc8] sm:$0xff]  }
  0x64   : > { %v1778_v52 = vld [vmem:[%s2100_s20 + $0x60] sm:$0xff]   ;;  %v1780_v53 = vld [vmem:[%s2100_s20 + $0x68] sm:$0x1f]   ;;  %v1779_v54 = vld [vmem:[%s2100_s20 + $0xd0] sm:$0xff]  }
  0x65   : > { %807 = vmatpush1.bf16.msra.mxu0 %v1758_v30  ;;  %968 = vmatpush1.bf16.msra.mxu1 %v1759_v31  ;;  %v1781_v56 = vld [vmem:[%s2100_s20 + $0xd8] sm:$0x1f]   ;;  %v1185_v57 = vld [vmem:[%s635_s18] sm:$0xff]  ;;  %v1186_v58 = vld [vmem:[%s635_s18 + $0x8] sm:$0xff]  ;;  %v800_v59 = vand.u32 %v1780_v53, %v2156_v55 }
  0x66   : > { %808 = vmatprep.subr.bf16.mxu0 %v1822_v24  ;;  %969 = vmatprep.subr.bf16.mxu1 %v1822_v24  ;;  %v961_v60 = vand.u32 %v1781_v56, %v2156_v55  ;;  %v1720_v61 = vpack.c.bf16 %v1186_v58, %v1185_v57  ;;  %v1784_v63 = vld [vmem:[%s2100_s20 + $0xe0] sm:$0xff]   ;;  %v1187_v0 = vld [vmem:[%s635_s18 + $0x10] sm:$0xff]  ;;  %v1785_v2 = vld [vmem:[%s2100_s20 + $0xe8] sm:$0xff]  }
  0x67   : > { %v1786_v3 = vld [vmem:[%s2100_s20 + $0xf0] sm:$0xff]   ;;  %v1787_v6 = vld [vmem:[%s2100_s20 + $0xf8] sm:$0xff]   ;;  %v1788_v9 = vld [vmem:[%s2100_s20 + $0x100] sm:$0xff]  }
  0x68   : > { %v1789_v12 = vld [vmem:[%s2100_s20 + $0x108] sm:$0xff]   ;;  %v1790_v15 = vld [vmem:[%s2100_s20 + $0x110] sm:$0xff]   ;;  %v1791_v18 = vld [vmem:[%s2100_s20 + $0x118] sm:$0xff]  }
  0x69   : > { %809 = vmatpush1.bf16.msra.mxu0 %v1760_v32  ;;  %970 = vmatpush1.bf16.msra.mxu1 %v1761_v33  ;;  %v1181_v20 = vld [vmem:[%s2297_s3 + $0x60] sm:$0xff]  ;;  %v1182_v22 = vld [vmem:[%s2297_s3 + $0x68] sm:$0xff]  ;;  %v1183_v23 = vld [vmem:[%s2297_s3 + $0x70] sm:$0xff] }
  0x6a   : > { %810 = vmatprep.subr.bf16.mxu0 %v1822_v24  ;;  %971 = vmatprep.subr.bf16.mxu1 %v1822_v24  ;;  %v1792_v21 = vld [vmem:[%s2100_s20 + $0x120] sm:$0xff]   ;;  %v1184_v26 = vld [vmem:[%s2297_s3 + $0x78] sm:$0xff]  ;;  %v1794_v27 = vld [vmem:[%s2100_s20 + $0x130] sm:$0xff]  }
  0x6b   : > { %v1795_v28 = vld [vmem:[%s2100_s20 + $0x138] sm:$0xff]   ;;  %v1796_v29 = vld [vmem:[%s2100_s20 + $0x140] sm:$0xff]   ;;  %v1797_v30 = vld [vmem:[%s2100_s20 + $0x148] sm:$0x1f]  }
  0x6c   : > { %v1122_v31 = vand.u32 %v1797_v30, %v2156_v55 }
  0x6d   : > { %811 = vmatpush1.bf16.msra.mxu0 %v1762_v34  ;;  %972 = vmatpush1.bf16.msra.mxu1 %v1763_v35 }
  0x6e   : > { %812 = vmatprep.subr.bf16.mxu0 %v1822_v24  ;;  %973 = vmatprep.subr.bf16.mxu1 %v1822_v24 }
  0x71   : > { %813 = vmatpush1.bf16.msra.mxu0 %v1764_v36  ;;  %974 = vmatpush1.bf16.msra.mxu1 %v1765_v37 }
  0x72   : > { %814 = vmatprep.subr.bf16.mxu0 %v1822_v24  ;;  %975 = vmatprep.subr.bf16.mxu1 %v1822_v24 }
  0x75   : > { %815 = vmatpush1.bf16.msra.mxu0 %v1766_v38  ;;  %976 = vmatpush1.bf16.msra.mxu1 %v1767_v39 }
  0x76   : > { %816 = vmatprep.subr.bf16.mxu0 %v1822_v24  ;;  %977 = vmatprep.subr.bf16.mxu1 %v1822_v24 }
  0x79   : > { %817 = vmatpush1.bf16.msra.mxu0 %v1768_v40  ;;  %978 = vmatpush1.bf16.msra.mxu1 %v1769_v41 }
  0x7a   : > { %818 = vmatprep.subr.bf16.mxu0 %v1822_v24  ;;  %979 = vmatprep.subr.bf16.mxu1 %v1822_v24 }
  0x7d   : > { %819 = vmatpush1.bf16.msra.mxu0 %v1770_v42  ;;  %980 = vmatpush1.bf16.msra.mxu1 %v1771_v43 }
  0x7e   : > { %820 = vmatprep.subr.bf16.mxu0 %v1822_v24  ;;  %981 = vmatprep.subr.bf16.mxu1 %v1822_v24 }
  0x81   : > { %821 = vmatpush1.bf16.msra.mxu0 %v1772_v44  ;;  %982 = vmatpush1.bf16.msra.mxu1 %v1773_v45 }
  0x82   : > { %822 = vmatprep.subr.bf16.mxu0 %v1822_v24  ;;  %983 = vmatprep.subr.bf16.mxu1 %v1822_v24 }
  0x85   : > { %823 = vmatpush1.bf16.msra.mxu0 %v1774_v46  ;;  %984 = vmatpush1.bf16.msra.mxu1 %v1775_v47 }
  0x86   : > { %824 = vmatprep.subr.bf16.mxu0 %v1822_v24  ;;  %985 = vmatprep.subr.bf16.mxu1 %v1822_v24 }
  0x89   : > { %825 = vmatpush1.bf16.msra.mxu0 %v1776_v48  ;;  %986 = vmatpush1.bf16.msra.mxu1 %v1777_v49 }
  0x8a   : > { %826 = vmatprep.subr.bf16.mxu0 %v1822_v24  ;;  %987 = vmatprep.subr.bf16.mxu1 %v1822_v24 }
  0x8d   : > { %827 = vmatpush1.bf16.msra.mxu0 %v1778_v52  ;;  %988 = vmatpush1.bf16.msra.mxu1 %v1779_v54 }
  0x8e   : > { %828 = vmatprep.subr.bf16.mxu0 %v1822_v24  ;;  %989 = vmatprep.subr.bf16.mxu1 %v1822_v24 }
  0x91   : > { %829 = vmatpush1.bf16.msra.mxu0 %v800_v59  ;;  %990 = vmatpush1.bf16.msra.mxu1 %v961_v60 }
  0x92   : > { %1124 = vmatprep.subr.bf16.mxu0 %v1822_v24  ;;  %1721 = vmatprep.subr.bf16.mxu1 %v1720_v61 }
  0x94   : > { %835 = vmatmul.mubr.bf16.vlgmr.msra.gmra.mrb[0].mxu0 %v2167_v62  ;;  %996 = vmatmul.mubr.bf16.vlgmr.msra.gmra.mrb[0].mxu1 %v2167_v62 }
  0x95   : > { %1125 = vmatpush1.bf16.msra.mxu0 %v1784_v63  ;;  %1723 = vmatpush3.bf16.msra.mxu1 %v1720_v61 }
  0x96   : > { %1126 = vmatprep.subr.bf16.mxu0 %v1822_v24  ;;  %1694 = vmatprep.subr.mxu1 %v1187_v0 }
  0x97   : > { %1696 = vmatprep.mubr.msk.f32.mxu1 %vm1188_vm3, %v1169_v1  ;;  %1648 = vmatprep.mubr.msk.bf16.mxu0 %vm791_vm0, %v2094_v25  ;;  %v1793_v25 = vld [vmem:[%s2100_s20 + $0x128] sm:$0xff]   ;;  %s2272_s20 = scalar_lea.vmem %s2296_s2, %s1543_s24 }
  0x98   : > { %v1561_v40 = vld [vmem:[%s2272_s20] ss:$0 sm:$0xff] }
  0x99   : > { %1127 = vmatpush1.bf16.msra.mxu0 %v1785_v2  ;;  %1695 = vmatpush3.msra.mxu1 %v1187_v0 }
  0x9a   : > { %1128 = vmatprep.subr.bf16.mxu0 %v1822_v24 }
  0x9c   : > { %1697 = vmatmul.mubr.msk.f32.vlgmr.msra.gmra.mrb[4].mxu1 %vm1188_vm3, %v1170_v4 }
  0x9d   : > { %1129 = vmatpush1.bf16.msra.mxu0 %v1786_v3  ;;  %1699 = vmatprep.mubr.msk.f32.mxu1 %vm1188_vm3, %v1171_v5 }
  0x9e   : > { %1130 = vmatprep.subr.bf16.mxu0 %v1822_v24 }
  0xa0   : > { %1700 = vmatmul.mubr.msk.f32.gmra.mrb[6].mxu1 %vm1188_vm3, %v1172_v7  ;;  %v1649_v7 = vld [vmem:[%s2272_s20 + $0x2] ss:$0 sm:$0xff] }
  0xa1   : > { %1131 = vmatpush1.bf16.msra.mxu0 %v1787_v6  ;;  %1702 = vmatprep.mubr.msk.f32.mxu1 %vm1188_vm3, %v1173_v8 }
  0xa2   : > { %1132 = vmatprep.subr.bf16.mxu0 %v1822_v24 }
  0xa4   : > { %1703 = vmatmul.mubr.msk.f32.gmra.mrb[8].mxu1 %vm1188_vm3, %v1174_v10 }
  0xa5   : > { %1133 = vmatpush1.bf16.msra.mxu0 %v1788_v9  ;;  %1705 = vmatprep.mubr.msk.f32.mxu1 %vm1188_vm3, %v1175_v11 }
  0xa6   : > { %1134 = vmatprep.subr.bf16.mxu0 %v1822_v24 }
  0xa8   : > { %1706 = vmatmul.mubr.msk.f32.gmra.mrb[10].mxu1 %vm1188_vm3, %v1176_v13 }
  0xa9   : > { %1135 = vmatpush1.bf16.msra.mxu0 %v1789_v12  ;;  %1708 = vmatprep.mubr.msk.f32.mxu1 %vm1188_vm3, %v1177_v14 }
  0xaa   : > { %1136 = vmatprep.subr.bf16.mxu0 %v1822_v24 }
  0xac   : > { %1709 = vmatmul.mubr.msk.f32.gmra.mrb[12].mxu1 %vm1188_vm3, %v1178_v16 }
  0xad   : > { %1137 = vmatpush1.bf16.msra.mxu0 %v1790_v15  ;;  %1711 = vmatprep.mubr.msk.f32.mxu1 %vm1188_vm3, %v1179_v17 }
  0xae   : > { %1138 = vmatprep.subr.bf16.mxu0 %v1822_v24 }
  0xb0   : > { %1712 = vmatmul.mubr.msk.f32.gmra.mrb[14].mxu1 %vm1188_vm3, %v1180_v19 }
  0xb1   : > { %1139 = vmatpush1.bf16.msra.mxu0 %v1791_v18  ;;  %1714 = vmatprep.mubr.msk.f32.mxu1 %vm1188_vm3, %v1181_v20 }
  0xb2   : > { %1140 = vmatprep.subr.bf16.mxu0 %v1822_v24 }
  0xb4   : > { %1715 = vmatmul.mubr.msk.f32.gmra.mrb[16].mxu1 %vm1188_vm3, %v1182_v22 }
  0xb5   : > { %1141 = vmatpush1.bf16.msra.mxu0 %v1792_v21  ;;  %1717 = vmatprep.mubr.msk.f32.mxu1 %vm1188_vm3, %v1183_v23 }
  0xb6   : > { %1142 = vmatprep.subr.bf16.mxu0 %v1822_v24 }
  0xb8   : > { %1718 = vmatmul.mubr.msk.f32.gmra.mrb[18].mxu1 %vm1188_vm3, %v1184_v26 }
  0xb9   : > { %1143 = vmatpush1.bf16.msra.mxu0 %v1793_v25 }
  0xba   : > { %1144 = vmatprep.subr.bf16.mxu0 %v1822_v24 }
  0xbd   : > { %1145 = vmatpush1.bf16.msra.mxu0 %v1794_v27 }
  0xbe   : > { %1146 = vmatprep.subr.bf16.mxu0 %v1822_v24 }
  0xc1   : > { %1147 = vmatpush1.bf16.msra.mxu0 %v1795_v28 }
  0xc2   : > { %1148 = vmatprep.subr.bf16.mxu0 %v1822_v24 }
  0xc5   : > { %1149 = vmatpush1.bf16.msra.mxu0 %v1796_v29 }
  0xc6   : > { %1150 = vmatprep.subr.bf16.mxu0 %v1822_v24  ;;  %v1605_v24 = vld [vmem:[%s2272_s20 + $0x1] ss:$0 sm:$0xff] }
  0xc9   : > { %1151 = vmatpush1.bf16.msra.mxu0 %v1122_v31 }
  0xcc   : > { %1157 = vmatmul.mubr.bf16.vlgmr.msra.gmra.mrb[4].mxu0 %v2167_v62 }
 0x167   : > { %v836_v32 = vpop.f32.mrb[0].mxu0  ;;  %v997_v34 = vpop.f32.mrb[0].mxu1 }
 0x168   : > { %v838_v33 = vpop.f32.mrb[1].mxu0  ;;  %v999_v36 = vpop.f32.mrb[1].mxu1  ;;  %v1007_v41 = vadd.f32 %v1605_v24, %v997_v34  ;;  %v846_v42 = vadd.f32 %v1561_v40, %v836_v32 }
 0x169   : > { %v839_v35 = vpop.f32.mrb[2].mxu0  ;;  %v1000_v38 = vpop.f32.mrb[2].mxu1 }
 0x16a   : > { %v840_v37 = vpop.f32.mrb[3].mxu0  ;;  %v1001_v39 = vpop.f32.mrb[3].mxu1 }
 0x16f   : > { %v1698_v43 = vpop.f32.mrb[4].mxu1 }
 0x170   : > { %v1380_v44 = vmul.f32 %v1698_v43, %v1007_v41  ;;  %v1303_v45 = vpop.f32.mrb[5].mxu1 }
 0x171   : > { %v1378_v46 = vmul.f32 %v1303_v45, %v846_v42 }
 0x173   : > { %v1701_v47 = vpop.f32.mrb[6].mxu1 }
 0x174   : > { %v1379_v48 = vadd.f32 %v1701_v47, %v1378_v46  ;;  %v1313_v49 = vpop.f32.mrb[7].mxu1 }
 0x176   : > { %v1381_v50 = vadd.f32 %v1380_v44, %v1379_v48 }
 0x177   : > { %v1704_v51 = vpop.f32.mrb[8].mxu1 }
 0x178   : > { %v1387_v52 = vmul.f32 %v1704_v51, %v1007_v41  ;;  %v1323_v53 = vpop.f32.mrb[9].mxu1 }
 0x179   : > { %v1385_v54 = vmul.f32 %v1323_v53, %v846_v42 }
 0x17b   : > { %v1707_v55 = vpop.f32.mrb[10].mxu1 }
 0x17c   : > { %v1386_v56 = vadd.f32 %v1707_v55, %v1385_v54  ;;  %v1333_v57 = vpop.f32.mrb[11].mxu1 }
 0x17e   : > { %v1388_v58 = vadd.f32 %v1387_v52, %v1386_v56 }
 0x17f   : > { %v1710_v59 = vpop.f32.mrb[12].mxu1 }
 0x180   : > { %v1395_v60 = vmul.f32 %v1710_v59, %v1007_v41  ;;  %v1343_v61 = vpop.f32.mrb[13].mxu1 }
 0x181   : > { %v1393_v62 = vmul.f32 %v1343_v61, %v846_v42 }
 0x183   : > { %v1713_v63 = vpop.f32.mrb[14].mxu1 }
 0x184   : > { %v1394_v0 = vadd.f32 %v1713_v63, %v1393_v62  ;;  %v1353_v1 = vpop.f32.mrb[15].mxu1 }
 0x186   : > { %v1396_v2 = vadd.f32 %v1395_v60, %v1394_v0 }
 0x187   : > { %v1716_v3 = vpop.f32.mrb[16].mxu1 }
 0x188   : > { %v1363_v4 = vpop.f32.mrb[17].mxu1 }
 0x18b   : > { %v1719_v5 = vpop.f32.mrb[18].mxu1 }
 0x18c   : > { %v1371_v6 = vpop.f32.mrb[19].mxu1 }
 0x19f   : > { %v1158_v8 = vpop.f32.mrb[4].mxu0 }
 0x1a0   : > { %v1168_v9 = vadd.f32 %v1649_v7, %v1158_v8  ;;  %v1160_v10 = vpop.f32.mrb[5].mxu0 }
 0x1a1   : > { %v1161_v11 = vpop.f32.mrb[6].mxu0  ;;  %1407 = sbr.rel (!%p1889_p5) target bundleno = 432 (0x1b0), region = 123 }
 0x1a2   : > { %v1382_v12 = vmul.f32 %v1313_v49, %v1168_v9  ;;  %v1389_v13 = vmul.f32 %v1333_v57, %v1168_v9  ;;  %v1397_v14 = vmul.f32 %v1353_v1, %v1168_v9  ;;  %v1162_v15 = vpop.f32.mrb[7].mxu0 }
 0x1a4   : > { %v1383_v16 = vadd.f32 %v1382_v12, %v1381_v50  ;;  %v1390_v17 = vadd.f32 %v1389_v13, %v1388_v58  ;;  %v1398_v18 = vadd.f32 %v1397_v14, %v1396_v2 }
 0x1a6   : > { %1384 = vst [vmem:[%s666_s29] sm:$0xff] %v1383_v16  ;;  %1666 = vst [vmem:[%s666_s29 + $0x8] sm:$0xff] %v1390_v17 }
 0x1a7   : > { %1667 = vst [vmem:[%s666_s29 + $0x10] sm:$0xff] %v1398_v18 }
 0x1ad   : > { %v1441_v19 = vld [vmem:[%s666_s29] sm:$0xff]  ;;  %v1443_v20 = vld [vmem:[%s666_s29 + $0x8] sm:$0xff] }
 0x1ae   : > { %v1445_v21 = vld [vmem:[%s666_s29 + $0x10] sm:$0xff]  ;;  %1442 = vst [vmem:[%s1409_s8] sm:$0xff] %v1441_v19  ;;  %1444 = vst [vmem:[%s1409_s8 + $0x10] sm:$0xff] %v1443_v20 }
 0x1af   : > { %1446 = vst [vmem:[%s1409_s8 + $0x20] sm:$0xff] %v1445_v21 }
 0x1b0 PF: > { %p12_p11 = scmp.ge.s32.totalorder %s1873_s22, 4   ;;  %s2302_s18 = smov %s1816_s19 }
 0x1b1   : > { %s2303_s19 = smov %s1883_s25  ;;  %s2304_s20 = smov %s1873_s22 }
 0x1b2   :  { %14 = sbr.rel (!%p12_p11) target bundleno = 2 (0x2), region = 207 }

</bundles_post_ra>
